<compile_context>
chip_gen: v6e
topology: v6e:2x2x1
jax: 0.10.0
libtpu: 0.0.40
codegen_flags: <defaults>
</compile_context>

<pallas_src>
import functools

import jax
import jax.numpy as jnp
from jax.experimental import pallas as pl
from jax.experimental.pallas import tpu as pltpu

FILTERS = 4
RES_SCALE = 0.2
LRELU_SLOPE = 0.01          # nn.LeakyReLU() default (the spec module uses the default)
N_DENSE_BLOCKS = 3
CONVS_PER_BLOCK = 5

# float32 preserves exact module semantics.  Set to jnp.bfloat16 on v6e/v7x for
# the high-rate MXU path at production sizes (accumulation stays f32 either way).
COMPUTE_DTYPE = jnp.float32


# ----------------------------------------------------------------------------
# Lane-roll direction probe (run once): makes the kernel independent of the
# sign convention of pltpu.roll.
# ----------------------------------------------------------------------------
_ROLL_SIGN = None


def _lane_roll_sign():
    """Sign s.t. pltpu.roll(x, shift=(sign*k) % n, axis=1)[:, p] == x[:, (p+k) % n]."""
    global _ROLL_SIGN
    if _ROLL_SIGN is None:
        n = 256

        def probe(x_ref, o_ref):
            o_ref[...] = pltpu.roll(x_ref[...], shift=1, axis=1)

        x = jax.lax.broadcasted_iota(jnp.float32, (8, n), 1)
        out = pl.pallas_call(
            probe, out_shape=jax.ShapeDtypeStruct((8, n), jnp.float32)
        )(x)
        v = float(out[0, 0])
        if abs(v - (n - 1)) < 0.5:    # np.roll convention: out[i] = in[i - shift]
            _ROLL_SIGN = -1
        elif abs(v - 1.0) < 0.5:      # opposite convention: out[i] = in[i + shift]
            _ROLL_SIGN = 1
        else:
            raise RuntimeError(f"unexpected pltpu.roll semantics (probe={v})")
    return _ROLL_SIGN


# ----------------------------------------------------------------------------
# Fused RRDB kernel
# ----------------------------------------------------------------------------
def _rrdb_kernel(x_ref, w_ref, b_ref, o_ref, col_ref, *,
                 H, W, filters, n_blocks, roll_sign, compute_dtype):
    HW = H * W
    f = filters
    cmax = CONVS_PER_BLOCK * f            # widest conv input channel count

    # Per-output-position coordinates along the lane axis (flattened H*W).
    pos = jax.lax.broadcasted_iota(jnp.int32, (1, HW), 1)
    yy = pos // W
    xx = pos % W

    # Unwritten rows of the im2col scratch are multiplied by zero-padded weight
    # rows; zero them once so 0 * (uninitialized VMEM) can never be NaN.
    col_ref[...] = jnp.zeros((9 * cmax, HW), compute_dtype)

    def add_group(vals, g):
        """Scatter `vals` (f, HW) into the im2col scratch as channel group g,
        rolled + edge-masked for each of the 9 taps of a 3x3 'same' conv."""
        vals = vals.astype(compute_dtype)
        for t in range(9):
            dy, dx = t // 3 - 1, t % 3 - 1
            s = dy * W + dx                     # flat lane shift for tap (dy, dx)
            if s == 0:
                tap = vals
            else:
                rolled = pltpu.roll(vals, shift=(roll_sign * s) % HW, axis=1)
                valid = ((yy + dy >= 0) & (yy + dy < H) &
                         (xx + dx >= 0) & (xx + dx < W))
                tap = jnp.where(valid, rolled, 0)     # zero padding at image edges
            base = t * cmax + g * f
            col_ref[base:base + f, :] = tap

    x0 = x_ref[...].astype(jnp.float32)       # RRDB input, (f, HW)
    y = x0
    for blk in range(n_blocks):
        xb = y                                # dense-block input (block residual src)
        add_group(xb, 0)
        out = None
        for i in range(CONVS_PER_BLOCK):
            idx = blk * CONVS_PER_BLOCK + i
            # One lane-dense MXU matmul per conv: (f, 9*cmax) @ (9*cmax, HW).
            out = jnp.dot(w_ref[idx], col_ref[...],
                          preferred_element_type=jnp.float32) + b_ref[idx]
            if i < CONVS_PER_BLOCK - 1:
                out = jnp.where(out > 0, out, LRELU_SLOPE * out)   # LeakyReLU
                add_group(out, i + 1)         # dense "concat" == sub-tile VMEM store
        y = out * RES_SCALE + xb              # DenseResidualBlock residual
    o_ref[...] = (y * RES_SCALE + x0).astype(o_ref.dtype)          # RRDB residual


def rrdb_forward(x_nchw, w_packed, b_packed, *, compute_dtype=COMPUTE_DTYPE):
    """ResidualInResidualDenseBlock.forward; input/output are NCHW (PyTorch)."""
    N, C, H, W = x_nchw.shape
    HW = H * W
    n_convs = w_packed.shape[0]
    n_blocks = n_convs // CONVS_PER_BLOCK
    cmax = CONVS_PER_BLOCK * C
    assert w_packed.shape == (n_convs, C, 9 * cmax)
    assert b_packed.shape == (n_convs, C, HW)

    kernel = functools.partial(
        _rrdb_kernel, H=H, W=W, filters=C, n_blocks=n_blocks,
        roll_sign=_lane_roll_sign(), compute_dtype=compute_dtype)

    x = x_nchw.reshape(N, C, HW)   # free: NCHW is already (C, H*W)-contiguous
    out = pl.pallas_call(
        kernel,
        out_shape=jax.ShapeDtypeStruct((N, C, HW), jnp.float32),
        grid_spec=pltpu.PrefetchScalarGridSpec(
            num_scalar_prefetch=0,
            grid=(N,),
            in_specs=[
                pl.BlockSpec((None, C, HW), lambda n: (n, 0, 0)),          # x
                pl.BlockSpec((n_convs, C, 9 * cmax), lambda n: (0, 0, 0)),  # weights (resident)
                pl.BlockSpec((n_convs, C, HW), lambda n: (0, 0, 0)),        # biases  (resident)
            ],
            out_specs=pl.BlockSpec((None, C, HW), lambda n: (n, 0, 0)),
            scratch_shapes=[pltpu.VMEM((9 * cmax, HW), compute_dtype)],     # im2col
        ),
        compiler_params=pltpu.CompilerParams(
            dimension_semantics=("parallel",),   # batch across TensorCores (v7x)
        ),
    )(x, w_packed, b_packed)
    return out.reshape(N, C, H, W)


# ----------------------------------------------------------------------------
# Parameter construction / packing
# ----------------------------------------------------------------------------
def init_rrdb_params(key, filters, n_blocks=N_DENSE_BLOCKS):
    """Random params for n_blocks DenseResidualBlocks: 5 convs each, HWIO + bias."""
    all_params = []
    for _ in range(n_blocks):
        block = []
        for i in range(1, CONVS_PER_BLOCK + 1):
            cin = i * filters
            key, kw, kb = jax.random.split(key, 3)
            fan_in = 9 * cin
            w = jax.random.normal(kw, (3, 3, cin, filters), jnp.float32) * fan_in ** -0.5
            b = jax.random.normal(kb, (filters,), jnp.float32) * 0.01
            block.append((w, b))
        all_params.append(block)
    return all_params, key


def pack_rrdb_params(all_params, H, W, compute_dtype=COMPUTE_DTYPE):
    """Pack all conv weights/biases into the kernel's resident-VMEM layout.

    w_packed[k, co, t*cmax + c] = w_hwio_k[t//3, t%3, c, co]   (0 for c >= cin_k)
    b_packed[k, co, :]          = bias_k[co]                   (lane pre-broadcast)
    """
    filters = all_params[0][0][0].shape[-1]
    cmax = CONVS_PER_BLOCK * filters
    HW = H * W
    ws, bs = [], []
    for block in all_params:
        for (w, b) in block:
            cin = w.shape[2]
            wt = jnp.transpose(w, (3, 0, 1, 2)).reshape(filters, 9, cin)
            wt = jnp.pad(wt, ((0, 0), (0, 0), (0, cmax - cin)))
            ws.append(wt.reshape(filters, 9 * cmax))
            bs.append(jnp.broadcast_to(b[:, None], (filters, HW)))
    return (jnp.stack(ws).astype(compute_dtype),
            jnp.stack(bs).astype(jnp.float32))


# ----------------------------------------------------------------------------
# Pure-JAX reference (mirrors the PyTorch module) for verification
# ----------------------------------------------------------------------------
def _conv3x3_ref(x_nchw, w_hwio, bias):
    out = jax.lax.conv_general_dilated(
        x_nchw, w_hwio, window_strides=(1, 1), padding="SAME",
        dimension_numbers=("NCHW", "HWIO", "NCHW"),
        precision=jax.lax.Precision.HIGHEST)
    return out + bias[None, :, None, None]


def rrdb_reference(x_nchw, all_params):
    y = x_nchw
    for block in all_params:
        inputs = y
        out = None
        for i, (w, b) in enumerate(block):
            out = _conv3x3_ref(inputs, w, b)
            if i < CONVS_PER_BLOCK - 1:
                out = jnp.where(out > 0, out, LRELU_SLOPE * out)
            inputs = jnp.concatenate([inputs, out], axis=1)
        y = out * RES_SCALE + y
    return y * RES_SCALE + x_nchw


if __name__ == "__main__":
    key = jax.random.PRNGKey(0)

    N, H, W = 2, 16, 16
    all_params, key = init_rrdb_params(key, FILTERS)
    key, xkey = jax.random.split(key)
    x = jax.random.normal(xkey, (N, FILTERS, H, W), jnp.float32)

    w_packed, b_packed = pack_rrdb_params(all_params, H, W)

    out = rrdb_forward(x, w_packed, b_packed)
    out = jax.block_until_ready(out)
    assert out.shape == x.shape and out.dtype == jnp.float32

    ref = rrdb_reference(x, all_params)
    err = float(jnp.max(jnp.abs(out - ref)))
    assert err < 1e-2, f"Pallas RRDB mismatch vs reference: max |err| = {err}"

    print("KERNEL_OK")
</pallas_src>

<mosaic_0001>
module attributes {stable_mosaic.version = 11 : i64} {
  func.func @probe(%arg0: memref<8x256xf32, #tpu.memory_space<vmem>>, %arg1: memref<8x256xf32, #tpu.memory_space<vmem>>) attributes {dimension_semantics = [], scalar_prefetch = 0 : i64, scratch_operands = 0 : i64, tpu.core_type = #tpu.core_type<tc>} {
    %c0 = arith.constant 0 : index
    %c0_0 = arith.constant 0 : index
    %0 = vector.load %arg0[%c0, %c0_0] : memref<8x256xf32, #tpu.memory_space<vmem>>, vector<8x256xf32>
    %c1_i32 = arith.constant 1 : i32
    %1 = tpu.dynamic_rotate %0 by %c1_i32 dim 1 : vector<8x256xf32>, i32 -> vector<8x256xf32>
    %c0_1 = arith.constant 0 : index
    %c0_2 = arith.constant 0 : index
    %2 = vector.load %arg1[%c0_1, %c0_2] : memref<8x256xf32, #tpu.memory_space<vmem>>, vector<8x256xf32>
    tpu.vector_store %arg1[%c0_1, %c0_2], %1 {strides = array<i32>} : memref<8x256xf32, #tpu.memory_space<vmem>>, vector<8x256xf32>,
    return
  }
}

</mosaic_0001>

<bundles_post_ra>
// kernel: tpu_custom_call.1
= control target key start
LH: loop header
LB: loop body
LE: loop exit
PB: predicated region body
PF: predicated region fallthrough
CT: control target
= control target key end

     0   :  { %6 = vsyncpa [#allocation3], 0  ;;  %s115_s0 = inlined_call_operand.hbm [shape: f32[8,256], index: 0, kind: input, shape index: {}]   ;;  %s116_s1 = inlined_call_operand.hbm [shape: f32[8,256], index: 1, kind: output, shape index: {}]  }
   0x1   :  { %7 = vsyncpa [#allocation4], 0  ;;  %s96_s6 = smov [#allocation2]  }
   0x2   :  { %s14_s7 = sshll.u32 %s96_s6, 4  ;;  %s15_s7 = int_to_ptr.vmem [resolvable:$true] %s14_s7 }
   0x3   :  { %s60_s8 = scalar_lea.vmem %s15_s7, 256  ;;  %p65_p1 = scmp.lt.s32.totalorder %s15_s7, %s15_s7 }
   0x4   :  { %p61_p0 = scmp.ne.s32.totalorder %s15_s7, %s60_s8  ;;  %p66_p2 = scmp.lt.s32.totalorder %s60_s8, %s60_s8 }
   0x6   :  { %p67_p3 = por %p66_p2, %p65_p1 }
   0x8   :  { %p68_p4 = pnand %p67_p3, %p61_p0 }
   0xa   :  { %71 = shalt.err (!%p68_p4)
}
   0xb   :  { %17 = dma.hbm_to_vmem [thread:$0]  %s115_s0, 256, %s15_s7, [#allocation3]  }
   0xc   :  { %92 = dma.done.wait [#allocation3], 256  }
   0xd   :  { %93 = vsyncadd [#allocation3], 4294967040  ;;  %v21_v0 = vld [vmem:[#allocation2] sm:$0xff]  ;;  %s97_s11 = smov 1   ;;  %v22_v1 = vld [vmem:[#allocation2 + $0x8] sm:$0xff]  ;;  %v27_v2 = vlaneseq  ;;  %s98_s12 = smov [#allocation5]  }
   0xe   :  { %23 = vrot.lane.b32.xlu0 %v21_v0, %s97_s11  ;;  %s40_s13 = sshll.u32 %s98_s12, 4  ;;  %s41_s13 = int_to_ptr.vmem [resolvable:$true] %s40_s13 }
   0xf   :  { %v28_v3 = vand.u32 127, %v27_v2  ;;  %s72_s0 = scalar_lea.vmem %s41_s13, 256  ;;  %p77_p6 = scmp.lt.s32.totalorder %s41_s13, %s41_s13 }
  0x10   :  { %p73_p5 = scmp.ne.s32.totalorder %s41_s13, %s72_s0  ;;  %p78_p7 = scmp.lt.s32.totalorder %s72_s0, %s72_s0 }
  0x11   :  { %vm29_vm0 = vcmp.lt.s32.totalorder %v28_v3, 1 }
  0x12   :  { %25 = vrot.lane.b32.xlu0 %v22_v1, %s97_s11  ;;  %p79_p8 = por %p78_p7, %p77_p6 }
  0x14   :  { %p80_p9 = pnand %p79_p8, %p73_p5 }
  0x80   :  { %v24_v4 = vpop.permute.xlu0 %23 }
  0x84   :  { %v26_v5 = vpop.permute.xlu0 %25 }
  0x85   :  { %v30_v6 = vsel %vm29_vm0, %v24_v4, %v26_v5  ;;  %v31_v7 = vsel %vm29_vm0, %v26_v5, %v24_v4 }
  0x86   :  { %32 = vst [vmem:[#allocation5] sm:$0xff] %v31_v7  ;;  %33 = vst [vmem:[#allocation5 + $0x8] sm:$0xff] %v30_v6 }
  0x87   :  { %83 = shalt.err (!%p80_p9)
}
  0x88   :  { %43 = dma.vmem_to_hbm [thread:$0]  %s41_s13, 256, %s116_s1, [#allocation4]  }
  0x89   :  { %94 = dma.done.wait [#allocation4], 256  }
  0x8a   :  { %95 = vsyncadd [#allocation4], 4294967040 }
  0x8b   :  { %47 = vsyncpa [#allocation3], 1 }
  0x8c   :  { %48 = vsyncpa [#allocation4], 1 }

</bundles_post_ra>
